<compile_context>
chip_gen: v7x
topology: tpu7x:2x2x1
jax: 0.10.0
libtpu: 0.0.40
codegen_flags: <defaults>
</compile_context>

<pallas_src>
import functools

import jax
import jax.numpy as jnp
from jax.experimental import pallas as pl
from jax.experimental.pallas import tpu as pltpu


def _outconv_kernel(w_ref, b_ref, x_ref, o_ref, *, cin, cout, bn, compute_dtype):
    """o[b, co] = sum_ci w[co, ci] * x[b, ci] + bias[co]  (per (S, L) plane).

    w_ref : (cout*cin,) f32 in SMEM (scalar broadcasts)
    b_ref : (cout,)     f32 in SMEM
    x_ref : (bn, cin,  S, L) in VMEM  -- dense sublane x lane planes
    o_ref : (bn, cout, S, L) in VMEM
    """
    for b in range(bn):                                    # statically unrolled
        planes = [x_ref[b, ci].astype(compute_dtype) for ci in range(cin)]
        for co in range(cout):                             # tiny, unrolled
            acc = planes[0] * w_ref[co * cin].astype(compute_dtype)
            for ci in range(1, cin):
                acc = acc + planes[ci] * w_ref[co * cin + ci].astype(compute_dtype)
            acc = acc + b_ref[co].astype(compute_dtype)
            o_ref[b, co] = acc.astype(o_ref.dtype)         # dense, unmasked store


def _choose_layout(hw, target_spatial_tile=32768):
    """Pick (hw_pad, lane, sub): spatial axis is viewed as (hw_pad//lane, lane)
    and blocked (sub, lane).  lane % 128 == 0 (or lane == full extent),
    sub % 8 == 0 (or sub == full row extent) -> legal (8,128) tiling."""
    if hw % 128 != 0:
        if hw <= 1024:
            return hw, hw, 1                 # tiny/odd image: one small block
        hw_pad = -(-hw // 128) * 128         # pad (rare; done in the wrapper)
    else:
        hw_pad = hw
    if hw_pad % 512 == 0:
        lane = 512
    elif hw_pad % 256 == 0:
        lane = 256
    else:
        lane = 128
    rows = hw_pad // lane
    if rows < 8:
        return hw_pad, lane, rows            # full-extent sublane block
    sub = min((rows // 8) * 8, max(8, (target_spatial_tile // lane // 8) * 8))
    return hw_pad, lane, sub


def _pick_batch_block(n, grid_hw, per_image_step_bytes, target_bytes=512 * 1024):
    """Images per grid step: amortize per-step overhead (~0.35us) while keeping
    >= 2 total parallel steps so v7x's 2 TensorCores both get work."""
    if n <= 1 or per_image_step_bytes >= target_bytes:
        return 1
    bn = min(n, max(1, target_bytes // max(per_image_step_bytes, 1)))
    while bn > 1 and (n // bn) * grid_hw < 2:
        bn -= 1
    while n % bn != 0:                       # keep batch blocks non-ragged
        bn -= 1
    return bn


def outconv_forward(x_nchw, weight, bias, *, target_spatial_tile=32768):
    """1x1 conv forward, matching nn.Conv2d(in, out, kernel_size=1).

    x_nchw : (N, Cin, H, W)
    weight : (Cout, Cin, 1, 1)
    bias   : (Cout,)
    returns: (N, Cout, H, W)  (same dtype as x)
    """
    N, Cin, H, W = x_nchw.shape
    Cout = weight.shape[0]
    HW = H * W

    hw_pad, lane, sub = _choose_layout(HW, target_spatial_tile)
    rows = hw_pad // lane
    grid_hw = pl.cdiv(rows, sub)             # ragged last block is safe here

    # Pure reshapes of the contiguous HW axis — stays NCHW-native, no transpose.
    x3 = x_nchw.reshape(N, Cin, HW)
    if hw_pad != HW:
        x3 = jnp.pad(x3, ((0, 0), (0, 0), (0, hw_pad - HW)))
    x4 = x3.reshape(N, Cin, rows, lane)

    # Flattened 1-D SMEM scalar tables (avoids 2-D SMEM padding).
    w_flat = weight.reshape(Cout * Cin).astype(jnp.float32)
    b_vec = bias.reshape(Cout).astype(jnp.float32)

    per_image_step_bytes = (Cin + Cout) * sub * lane * x_nchw.dtype.itemsize
    bn = _pick_batch_block(N, grid_hw, per_image_step_bytes)

    # bf16-native FMAs on v6e/v7x; f32 otherwise (v5e has no bf16 VPU).
    compute_dtype = jnp.bfloat16 if x_nchw.dtype == jnp.bfloat16 else jnp.float32

    kernel = functools.partial(_outconv_kernel, cin=Cin, cout=Cout, bn=bn,
                               compute_dtype=compute_dtype)

    out4 = pl.pallas_call(
        kernel,
        out_shape=jax.ShapeDtypeStruct((N, Cout, rows, lane), x_nchw.dtype),
        grid_spec=pltpu.PrefetchScalarGridSpec(
            num_scalar_prefetch=0,
            grid=(N // bn, grid_hw),
            in_specs=[
                pl.BlockSpec(memory_space=pltpu.MemorySpace.SMEM),     # weight
                pl.BlockSpec(memory_space=pltpu.MemorySpace.SMEM),     # bias
                pl.BlockSpec((bn, Cin, sub, lane), lambda n, t: (n, 0, t, 0)),
            ],
            out_specs=pl.BlockSpec((bn, Cout, sub, lane),
                                   lambda n, t: (n, 0, t, 0)),
        ),
        compiler_params=pltpu.CompilerParams(
            dimension_semantics=("parallel", "parallel"),
        ),
    )(w_flat, b_vec, x4)

    out3 = out4.reshape(N, Cout, hw_pad)
    if hw_pad != HW:
        out3 = out3[:, :, :HW]
    return out3.reshape(N, Cout, H, W)


if __name__ == "__main__":
    # Module config (synthetic, deterministic init — no checkpoint loading).
    in_channels, out_channels = 4, 3
    N, H, W = 2, 16, 16

    key = jax.random.PRNGKey(0)
    kx, kw, kb = jax.random.split(key, 3)

    x = jax.random.normal(kx, (N, in_channels, H, W), dtype=jnp.float32)
    # nn.Conv2d(in, out, kernel_size=1): weight (out, in, 1, 1), bias (out,)
    weight = jax.random.normal(
        kw, (out_channels, in_channels, 1, 1), dtype=jnp.float32) * 0.1
    bias = jax.random.normal(kb, (out_channels,), dtype=jnp.float32) * 0.1

    out = outconv_forward(x, weight, bias)
    out = jax.block_until_ready(out)

    # Reference check (plain JAX einsum == 1x1 conv).
    ref = jnp.einsum("nchw,oc->nohw", x,
                     weight.reshape(out_channels, in_channels))
    ref = ref + bias[None, :, None, None]
    assert out.shape == (N, out_channels, H, W)
    assert jnp.allclose(out, ref, atol=1e-5, rtol=1e-5)

    print("KERNEL_OK")
</pallas_src>

<mosaic_0001>
module attributes {stable_mosaic.version = 11 : i64} {
  func.func @_outconv_kernel(%arg0: i32, %arg1: i32, %arg2: memref<12xf32, #tpu.memory_space<smem>>, %arg3: memref<3xf32, #tpu.memory_space<smem>>, %arg4: memref<1x4x1x256xf32, #tpu.memory_space<vmem>>, %arg5: memref<1x3x1x256xf32, #tpu.memory_space<vmem>>) attributes {dimension_semantics = [#tpu.dimension_semantics<parallel>, #tpu.dimension_semantics<parallel>], iteration_bounds = array<i64: 2, 1>, scalar_prefetch = 0 : i64, scratch_operands = 0 : i64, tpu.core_type = #tpu.core_type<tc>, window_params = [{transform_indices = @transform_0, window_bounds = array<i64: 12>}, {transform_indices = @transform_1, window_bounds = array<i64: 3>}, {transform_indices = @transform_2, window_bounds = array<i64: 1, 4, 1, 256>}, {transform_indices = @transform_3, window_bounds = array<i64: 1, 3, 1, 256>}]} {
    %c0 = arith.constant 0 : index
    %c0_0 = arith.constant 0 : index
    %c0_1 = arith.constant 0 : index
    %c0_2 = arith.constant 0 : index
    %0 = vector.load %arg4[%c0, %c0_0, %c0_1, %c0_2] : memref<1x4x1x256xf32, #tpu.memory_space<vmem>>, vector<1x1x1x256xf32>
    %1 = vector.shape_cast %0 : vector<1x1x1x256xf32> to vector<1x256xf32>
    %c0_3 = arith.constant 0 : index
    %c1 = arith.constant 1 : index
    %c0_4 = arith.constant 0 : index
    %c0_5 = arith.constant 0 : index
    %2 = vector.load %arg4[%c0_3, %c1, %c0_4, %c0_5] : memref<1x4x1x256xf32, #tpu.memory_space<vmem>>, vector<1x1x1x256xf32>
    %3 = vector.shape_cast %2 : vector<1x1x1x256xf32> to vector<1x256xf32>
    %c0_6 = arith.constant 0 : index
    %c2 = arith.constant 2 : index
    %c0_7 = arith.constant 0 : index
    %c0_8 = arith.constant 0 : index
    %4 = vector.load %arg4[%c0_6, %c2, %c0_7, %c0_8] : memref<1x4x1x256xf32, #tpu.memory_space<vmem>>, vector<1x1x1x256xf32>
    %5 = vector.shape_cast %4 : vector<1x1x1x256xf32> to vector<1x256xf32>
    %c0_9 = arith.constant 0 : index
    %c3 = arith.constant 3 : index
    %c0_10 = arith.constant 0 : index
    %c0_11 = arith.constant 0 : index
    %6 = vector.load %arg4[%c0_9, %c3, %c0_10, %c0_11] : memref<1x4x1x256xf32, #tpu.memory_space<vmem>>, vector<1x1x1x256xf32>
    %7 = vector.shape_cast %6 : vector<1x1x1x256xf32> to vector<1x256xf32>
    %c0_12 = arith.constant 0 : index
    %8 = memref.load %arg2[%c0_12] : memref<12xf32, #tpu.memory_space<smem>>
    %9 = vector.broadcast %8 : f32 to vector<1x256xf32>
    %10 = arith.mulf %1, %9 : vector<1x256xf32>
    %c1_13 = arith.constant 1 : index
    %11 = memref.load %arg2[%c1_13] : memref<12xf32, #tpu.memory_space<smem>>
    %12 = vector.broadcast %11 : f32 to vector<1x256xf32>
    %13 = arith.mulf %3, %12 : vector<1x256xf32>
    %14 = arith.addf %10, %13 : vector<1x256xf32>
    %c2_14 = arith.constant 2 : index
    %15 = memref.load %arg2[%c2_14] : memref<12xf32, #tpu.memory_space<smem>>
    %16 = vector.broadcast %15 : f32 to vector<1x256xf32>
    %17 = arith.mulf %5, %16 : vector<1x256xf32>
    %18 = arith.addf %14, %17 : vector<1x256xf32>
    %c3_15 = arith.constant 3 : index
    %19 = memref.load %arg2[%c3_15] : memref<12xf32, #tpu.memory_space<smem>>
    %20 = vector.broadcast %19 : f32 to vector<1x256xf32>
    %21 = arith.mulf %7, %20 : vector<1x256xf32>
    %22 = arith.addf %18, %21 : vector<1x256xf32>
    %c0_16 = arith.constant 0 : index
    %23 = memref.load %arg3[%c0_16] : memref<3xf32, #tpu.memory_space<smem>>
    %24 = vector.broadcast %23 : f32 to vector<1x256xf32>
    %25 = arith.addf %22, %24 : vector<1x256xf32>
    %c0_17 = arith.constant 0 : index
    %c0_18 = arith.constant 0 : index
    %c0_19 = arith.constant 0 : index
    %c0_20 = arith.constant 0 : index
    %26 = vector.load %arg5[%c0_17, %c0_18, %c0_19, %c0_20] : memref<1x3x1x256xf32, #tpu.memory_space<vmem>>, vector<1x1x1x256xf32>
    %27 = vector.shape_cast %26 : vector<1x1x1x256xf32> to vector<1x256xf32>
    %28 = vector.shape_cast %25 : vector<1x256xf32> to vector<1x1x1x256xf32>
    tpu.vector_store %arg5[%c0_17, %c0_18, %c0_19, %c0_20], %28 {strides = array<i32>} : memref<1x3x1x256xf32, #tpu.memory_space<vmem>>, vector<1x1x1x256xf32>,
    %c4 = arith.constant 4 : index
    %29 = memref.load %arg2[%c4] : memref<12xf32, #tpu.memory_space<smem>>
    %30 = vector.broadcast %29 : f32 to vector<1x256xf32>
    %31 = arith.mulf %1, %30 : vector<1x256xf32>
    %c5 = arith.constant 5 : index
    %32 = memref.load %arg2[%c5] : memref<12xf32, #tpu.memory_space<smem>>
    %33 = vector.broadcast %32 : f32 to vector<1x256xf32>
    %34 = arith.mulf %3, %33 : vector<1x256xf32>
    %35 = arith.addf %31, %34 : vector<1x256xf32>
    %c6 = arith.constant 6 : index
    %36 = memref.load %arg2[%c6] : memref<12xf32, #tpu.memory_space<smem>>
    %37 = vector.broadcast %36 : f32 to vector<1x256xf32>
    %38 = arith.mulf %5, %37 : vector<1x256xf32>
    %39 = arith.addf %35, %38 : vector<1x256xf32>
    %c7 = arith.constant 7 : index
    %40 = memref.load %arg2[%c7] : memref<12xf32, #tpu.memory_space<smem>>
    %41 = vector.broadcast %40 : f32 to vector<1x256xf32>
    %42 = arith.mulf %7, %41 : vector<1x256xf32>
    %43 = arith.addf %39, %42 : vector<1x256xf32>
    %c1_21 = arith.constant 1 : index
    %44 = memref.load %arg3[%c1_21] : memref<3xf32, #tpu.memory_space<smem>>
    %45 = vector.broadcast %44 : f32 to vector<1x256xf32>
    %46 = arith.addf %43, %45 : vector<1x256xf32>
    %c0_22 = arith.constant 0 : index
    %c1_23 = arith.constant 1 : index
    %c0_24 = arith.constant 0 : index
    %c0_25 = arith.constant 0 : index
    %47 = vector.load %arg5[%c0_22, %c1_23, %c0_24, %c0_25] : memref<1x3x1x256xf32, #tpu.memory_space<vmem>>, vector<1x1x1x256xf32>
    %48 = vector.shape_cast %47 : vector<1x1x1x256xf32> to vector<1x256xf32>
    %49 = vector.shape_cast %46 : vector<1x256xf32> to vector<1x1x1x256xf32>
    tpu.vector_store %arg5[%c0_22, %c1_23, %c0_24, %c0_25], %49 {strides = array<i32>} : memref<1x3x1x256xf32, #tpu.memory_space<vmem>>, vector<1x1x1x256xf32>,
    %c8 = arith.constant 8 : index
    %50 = memref.load %arg2[%c8] : memref<12xf32, #tpu.memory_space<smem>>
    %51 = vector.broadcast %50 : f32 to vector<1x256xf32>
    %52 = arith.mulf %1, %51 : vector<1x256xf32>
    %c9 = arith.constant 9 : index
    %53 = memref.load %arg2[%c9] : memref<12xf32, #tpu.memory_space<smem>>
    %54 = vector.broadcast %53 : f32 to vector<1x256xf32>
    %55 = arith.mulf %3, %54 : vector<1x256xf32>
    %56 = arith.addf %52, %55 : vector<1x256xf32>
    %c10 = arith.constant 10 : index
    %57 = memref.load %arg2[%c10] : memref<12xf32, #tpu.memory_space<smem>>
    %58 = vector.broadcast %57 : f32 to vector<1x256xf32>
    %59 = arith.mulf %5, %58 : vector<1x256xf32>
    %60 = arith.addf %56, %59 : vector<1x256xf32>
    %c11 = arith.constant 11 : index
    %61 = memref.load %arg2[%c11] : memref<12xf32, #tpu.memory_space<smem>>
    %62 = vector.broadcast %61 : f32 to vector<1x256xf32>
    %63 = arith.mulf %7, %62 : vector<1x256xf32>
    %64 = arith.addf %60, %63 : vector<1x256xf32>
    %c2_26 = arith.constant 2 : index
    %65 = memref.load %arg3[%c2_26] : memref<3xf32, #tpu.memory_space<smem>>
    %66 = vector.broadcast %65 : f32 to vector<1x256xf32>
    %67 = arith.addf %64, %66 : vector<1x256xf32>
    %c0_27 = arith.constant 0 : index
    %c2_28 = arith.constant 2 : index
    %c0_29 = arith.constant 0 : index
    %c0_30 = arith.constant 0 : index
    %68 = vector.load %arg5[%c0_27, %c2_28, %c0_29, %c0_30] : memref<1x3x1x256xf32, #tpu.memory_space<vmem>>, vector<1x1x1x256xf32>
    %69 = vector.shape_cast %68 : vector<1x1x1x256xf32> to vector<1x256xf32>
    %70 = vector.shape_cast %67 : vector<1x256xf32> to vector<1x1x1x256xf32>
    tpu.vector_store %arg5[%c0_27, %c2_28, %c0_29, %c0_30], %70 {strides = array<i32>} : memref<1x3x1x256xf32, #tpu.memory_space<vmem>>, vector<1x1x1x256xf32>,
    return
  }
  func.func @transform_0(%arg0: i32, %arg1: i32) -> i32 {
    %c0_i32 = arith.constant 0 : i32
    %c0_i32_0 = arith.constant 0 : i32
    return %c0_i32 : i32
  }
  func.func @transform_1(%arg0: i32, %arg1: i32) -> i32 {
    %c0_i32 = arith.constant 0 : i32
    %c0_i32_0 = arith.constant 0 : i32
    return %c0_i32 : i32
  }
  func.func @transform_2(%arg0: i32, %arg1: i32) -> (i32, i32, i32, i32) {
    %c0_i32 = arith.constant 0 : i32
    %c0_i32_0 = arith.constant 0 : i32
    %c0_i32_1 = arith.constant 0 : i32
    return %arg0, %c0_i32, %arg1, %c0_i32_0 : i32, i32, i32, i32
  }
  func.func @transform_3(%arg0: i32, %arg1: i32) -> (i32, i32, i32, i32) {
    %c0_i32 = arith.constant 0 : i32
    %c0_i32_0 = arith.constant 0 : i32
    %c0_i32_1 = arith.constant 0 : i32
    return %arg0, %c0_i32, %arg1, %c0_i32_0 : i32, i32, i32, i32
  }
}

</mosaic_0001>

<bundles_post_ra>
// kernel: tpu_custom_call.1
= control target key start
LH: loop header
LB: loop body
LE: loop exit
PB: predicated region body
PF: predicated region fallthrough
CT: control target
= control target key end

     0   :  { %8 = vsyncpa [#allocation5], 0  ;;  %s979_s0 = inlined_call_operand.hbm [shape: f32[12], index: 0, kind: input, shape index: {}]   ;;  %s980_s1 = inlined_call_operand.vmem [shape: f32[3], index: 1, kind: input, shape index: {}]   ;;  %s981_s2 = inlined_call_operand.hbm [shape: f32[2,4,1,256], index: 2, kind: input, shape index: {}]   ;;  %s982_s3 = inlined_call_operand.hbm [shape: f32[2,3,1,256], index: 3, kind: output, shape index: {}]  }
   0x1   :  { %9 = vsyncpa [#allocation6], 0 }
   0x2   :  { %10 = vsyncpa [#allocation3], 0 }
   0x3   :  { %12 = vsyncpa [#allocation3 + $0x1], 0 }
   0x4   :  { %13 = vsyncpa [#allocation4], 0 }
   0x5   :  { %15 = vsyncpa [#allocation4 + $0x1], 0  ;;  %s731_s12 = smov 0   ;;  %s733_s13 = smov 0  }
   0x6   :  { %s735_s14 = smov 0   ;;  %s737_s15 = smov 0  }
   0x7   :  { %s739_s16 = smov 0   ;;  %s741_s17 = smov 0  }
   0x8 LB: > { %s429_s18 = sadd.s32 4294967295, %s701_s17   ;;  %s430_s19 = sadd.s32 4294967294, %s701_s17   ;;  %s701_s17 = sphi %s741_s17, %s21_s17   ;;  %s697_s16 = sphi %s739_s16, %s1005_s16   ;;  %s693_s15 = sphi %s737_s15, %s1004_s15   ;;  %s689_s14 = sphi %s735_s14, %s1003_s14   ;;  %s685_s13 = sphi %s733_s13, %s1002_s13   ;;  %s681_s12 = sphi %s731_s12, %s1001_s12  }
   0x9   : > { %s84_s20 = sadd.s32 1, %s689_s14  ;;  %p91_p0 = scmp.ne.s32.totalorder %s689_s14, %s685_s13 }
   0xa   : > { %p92_p1 = scmp.eq.s32.totalorder %s701_s17, 0  ;;  %p97_p2 = scmp.ne.s32.totalorder %s685_s13, %s681_s12 }
   0xb   : > { %p769_p3 = scmp.eq.s32.totalorder %s429_s18, 0  ;;  %p123_p4 = scmp.eq.s32.totalorder %s429_s18, 1 }
   0xc   : > { %p93_p5 = por %p92_p1, %p91_p0  ;;  %p129_p6 = scmp.eq.s32.totalorder %s430_s19, 1 }
   0xd   : > { %s987_s21 = scalar_select %p769_p3, 1, 0 }
   0xe   : > { %p775_p7 = por %p769_p3, %p97_p2  ;;  %p779_p8 = por %p123_p4, %p91_p0 }
   0xf   : > { %p783_p9 = por %p129_p6, %p97_p2  ;;  %p431_p10 = scmp.ge.s32.totalorder %s701_s17, 1 }
  0x10   : > { %s988_s22 = scalar_select %p775_p7, 1, 0 }
  0x11   : > { %s989_s23 = scalar_select %p779_p8, 1, 0 }
  0x12   : > { %s990_s24 = scalar_select %p783_p9, 1, 0 }
  0x13   : > { %p136_p11 = scmp.lt.s32.totalorder %s701_s17, 3  ;;  %p495_p1 = scmp.lt.s32.totalorder %s701_s17, 2 }
  0x14   : > { %s158_s28 = sshll.u32 %s980_s1, 4  ;;  %s169_s4 = sand.u32 1, %s689_s14   ;;  %s159_s28 = int_to_ptr.vmem [resolvable:$true] %s158_s28 }
  0x15   : > { %p790_p13 = pnand %p431_p10, %p136_p11  ;;  %p800_p4 = pnand %p495_p1, %p93_p5 }
  0x16   : > { %s33_s5 = sadd.s32 1, %s697_s16  ;;  %s553_s8 = scalar_lea.hbm %s979_s0, 16 }
  0x17   : > { %p478_p0 = pneg %p790_p13  ;;  %p554_p5 = scmp.ne.s32.totalorder %s979_s0, %s553_s8 }
  0x18   : > { %p560_p1 = scmp.lt.u32.totalorder %s553_s8, %s979_s0 }
  0x19   : > { %p806_p2 = pnand %p478_p0, %p769_p3 }
  0x1b   : > { %p555_p6 = pneg %p806_p2 }
  0x1d   : > { %p556_p10 = pnand %p555_p6, %p554_p5 }
  0x1f   : > { %p557_p11 = pneg %p556_p10 }
  0x21   : > { %p562_p0 = pnand %p560_p1, %p557_p11 }
  0x23   : > { %565 = shalt.err (!%p562_p0)
}
  0x24   : > { %s703_s19 = smov [#allocation2]   ;;  %s566_s6 = scalar_lea.vmem %s159_s28, 16 }
  0x25   : > { %481 = dma.hbm_to_smem (!%p806_p2), %s979_s0, 16, %s703_s19, [#allocation5]  }
  0x26   : > { %p567_p12 = scmp.ne.s32.totalorder %s159_s28, %s566_s6  ;;  %p574_p7 = scmp.lt.s32.totalorder %s159_s28, %s159_s28 }
  0x27   : > { %p575_p5 = scmp.lt.s32.totalorder %s566_s6, %s566_s6 }
  0x28   : > { %p569_p9 = pnand %p567_p12, %p555_p6 }
  0x29   : > { %p576_p10 = por %p575_p5, %p574_p7 }
  0x2a   : > { %p570_p8 = pneg %p569_p9 }
  0x2c   : > { %p577_p3 = pnand %p576_p10, %p570_p8 }
  0x2e   : > { %580 = shalt.err (!%p577_p3)
}
  0x2f   : > { %s704_s7 = smov [#allocation7]   ;;  %p35_p11 = scmp.ge.s32.totalorder %s33_s5, 2 }
  0x30   : > { %484 = dma.vmem_to_smem (!%p806_p2), %s159_s28, 16, %s704_s7, [#allocation6]  }
  0x31   : > { %s435_s8 = sshll.u32 %s169_s4, 3  ;;  %s463_s9 = sshll.u32 %s697_s16, 7 }
  0x32   : > { %s1007_s5 = smov (%p35_p11, %s33_s5), 0  ;;  %s838_s30 = scalar_lea.hbm %s981_s2, %s463_s9 }
  0x33   : > { %s79_s18 = ssub.s32 %s697_s16, %s1007_s5  ;;  %s173_s19 = scalar_lea.vmem [#allocation8], %s435_s8 }
  0x34   : > { %s182_s28 = sshll.u32 %s173_s19, 4  ;;  %p82_p3 = scmp.eq.s32.totalorder %s79_s18, 0  ;;  %s842_s28 = int_to_ptr.vmem [resolvable:$true] %s182_s28 }
  0x35   : > { %s851_s27 = scalar_lea.sflag [#allocation3], %s169_s4  ;;  %s581_s6 = scalar_lea.hbm %s838_s30, 128 }
  0x36   : > { %s847_s26 = scalar_select %p82_p3, %s689_s14, %s84_s20  }
  0x37   : > { %p582_p7 = scmp.ne.s32.totalorder %s838_s30, %s581_s6  ;;  %p583_p8 = pneg %p800_p4 }
  0x38   : > { %s586_s9 = scalar_lea.hbm %s981_s2, 256  ;;  %p587_p2 = scmp.lt.u32.totalorder %s838_s30, %s981_s2 }
  0x39   : > { %p584_p9 = pnand %p583_p8, %p582_p7  ;;  %p588_p6 = scmp.lt.u32.totalorder %s586_s9, %s581_s6 }
  0x3a   : > { %p590_p0 = scmp.lt.u32.totalorder %s581_s6, %s838_s30 }
  0x3b   : > { %p585_p12 = pneg %p584_p9  ;;  %p589_p1 = por %p588_p6, %p587_p2 }
  0x3d   : > { %p591_p5 = por %p590_p0, %p589_p1 }
  0x3f   : > { %p592_p10 = pnand %p591_p5, %p585_p12 }
  0x41   : > { %595 = shalt.err (!%p592_p10)
}
  0x42   : > { %s596_s20 = scalar_lea.vmem %s842_s28, 128  ;;  %s705_s4 = smov [#allocation8]  }
  0x43   : > { %p597_p11 = scmp.ne.s32.totalorder %s842_s28, %s596_s20  ;;  %s601_s18 = sshll.u32 %s705_s4, 4  ;;  %s602_s18 = int_to_ptr.vmem [resolvable:$false] %s601_s18 }
  0x44   : > { %s603_s19 = scalar_lea.vmem %s602_s18, 256  ;;  %p604_p9 = scmp.lt.s32.totalorder %s842_s28, %s602_s18 }
  0x45   : > { %p599_p3 = pnand %p597_p11, %p583_p8  ;;  %p605_p2 = scmp.lt.s32.totalorder %s603_s19, %s596_s20 }
  0x47   : > { %p600_p7 = pneg %p599_p3  ;;  %p606_p6 = por %p605_p2, %p604_p9 }
  0x49   : > { %p607_p1 = pnand %p606_p6, %p600_p7 }
  0x4b   : > { %610 = shalt.err (!%p607_p1)
}
  0x4c   : > { %s706_s6 = smov 32   ;;  %s707_s7 = smov 2  }
  0x4d   : > { %488 = dma.hbm_to_vmem [thread:$0]  (!%p800_p4), %s838_s30, 128, %s842_s28, %s851_s27, %s706_s6, %s706_s6, %s707_s7  }
  0x4e   : > { %194 = sbr.rel (%p790_p13) target bundleno = 131 (0x83), region = 32  ;;  %p994_p8 = scmp.ne.s32.totalorder (!%p790_p13), %s987_s21, 0 }
  0x55   : > { %664 = dma.done.wait (%p994_p8), [#allocation5], 16  }
  0x56   : > { %666 = vsyncadd (%p994_p8), [#allocation5], 4294967280 }
  0x57   : > { %668 = dma.done.wait (%p994_p8), [#allocation6], 16  }
  0x58   : > { %670 = vsyncadd (%p994_p8), [#allocation6], 4294967280  ;;  %s890_s8 = sand.u32 1, %s685_s13   ;;  %p995_p13 = scmp.ne.s32.totalorder %s988_s22, 0 }
  0x59   : > { %s441_s25 = sshll.u32 %s890_s8, 3  ;;  %s205_s29 = scalar_lea.sflag [#allocation3], %s890_s8 }
  0x5a   : > { %s208_s30 = scalar_lea.vmem [#allocation8], %s441_s25 }
  0x5b   : > { %672 = dma.done.wait (%p995_p13), %s205_s29, 128  }
  0x5c   : > { %674 = vsyncadd (%p995_p13), %s205_s29, 4294967168 }
  0x5d   : > { %213 = sfence }
  0x5e   : > { %s239_s28 = sld [smem:[#allocation2]]  ;;  %s445_s27 = sld [smem:[#allocation2 + $0x1]]  ;;  %v232_v0 = vld [vmem:[%s208_s30] sm:$0x3]  ;;  %v442_v1 = vld [vmem:[%s208_s30 + $0x2] sm:$0x3]  ;;  %v257_v14 = vlaneseq }
  0x5f   : > { %s446_s9 = sld [smem:[#allocation2 + $0x2]]  ;;  %s447_s21 = sld [smem:[#allocation2 + $0x3]]  ;;  %v443_v2 = vld [vmem:[%s208_s30 + $0x4] sm:$0x3]  ;;  %v444_v4 = vld [vmem:[%s208_s30 + $0x6] sm:$0x3] }
  0x60   : > { %s898_s10 = sld [smem:[#allocation7]]  ;;  %s448_s11 = sld [smem:[#allocation2 + $0x4]]  ;;  %vm910_vm0 = vcmp.lt.s32.totalorder %v257_v14, 256 }
  0x61   : > { %s449_s20 = sld [smem:[#allocation2 + $0x5]]  ;;  %s450_s4 = sld [smem:[#allocation2 + $0x6]] }
  0x62   : > { %s451_s18 = sld [smem:[#allocation2 + $0x7]]  ;;  %s454_s22 = sld [smem:[#allocation2 + $0x8]] }
  0x63   : > { %s455_s19 = sld [smem:[#allocation2 + $0x9]]  ;;  %s900_s6 = sld [smem:[#allocation2 + $0xa]] }
  0x64   : > { %v240_v3 = vstv %s239_s28  ;;  %v243_v6 = vstv %s445_s27  ;;  %s902_s7 = sld [smem:[#allocation2 + $0xb]]  ;;  %s904_s25 = sld [smem:[#allocation7 + $0x1]] }
  0x65   : > { %v241_v5 = vmul.f32 %v240_v3, %v232_v0  ;;  %v244_v7 = vmul.f32 %v442_v1, %v243_v6  ;;  %v247_v8 = vstv %s446_s9  ;;  %v251_v9 = vstv %s447_s21  ;;  %s464_s29 = smul.u32 6, %s890_s8  ;;  %s907_s30 = sld [smem:[#allocation7 + $0x2]] }
  0x66   : > { %v248_v10 = vmul.f32 %v443_v2, %v247_v8  ;;  %v252_v12 = vmul.f32 %v444_v4, %v251_v9  ;;  %v263_v13 = vstv %s448_s11  ;;  %v255_v22 = vstv %s898_s10  ;;  %s465_s9 = smul.u32 96, %s693_s15  ;;  %s303_s15 = scalar_lea.sflag [#allocation4], %s890_s8 }
  0x67   : > { %v245_v11 = vadd.f32 %v244_v7, %v241_v5  ;;  %v264_v15 = vmul.f32 %v263_v13, %v232_v0  ;;  %v266_v16 = vstv %s449_s20  ;;  %v270_v17 = vstv %s450_s4  ;;  %s231_s28 = scalar_lea.vmem [#allocation9], %s464_s29  ;;  %p998_p12 = scmp.ne.s32.totalorder %s989_s23, 0 }
  0x68   : > { %v267_v19 = vmul.f32 %v442_v1, %v266_v16  ;;  %v271_v20 = vmul.f32 %v443_v2, %v270_v17  ;;  %v274_v21 = vstv %s451_s18  ;;  %v283_v24 = vstv %s454_s22  ;;  %s318_s27 = sshll.u32 %s231_s28, 4  ;;  %s928_s11 = scalar_lea.hbm %s982_s3, %s465_s9  ;;  %s921_s27 = int_to_ptr.vmem [resolvable:$true] %s318_s27 }
  0x69   : > { %v249_v18 = vadd.f32 %v248_v10, %v245_v11  ;;  %v275_v23 = vmul.f32 %v444_v4, %v274_v21  ;;  %v286_v25 = vstv %s455_s19  ;;  %v284_v28 = vmul.f32 %v283_v24, %v232_v0  ;;  %s611_s20 = scalar_lea.vmem %s921_s27, 96  ;;  %s708_s4 = smov [#allocation9]  }
  0x6a   : > { %v268_v27 = vadd.f32 %v267_v19, %v264_v15  ;;  %v287_v29 = vmul.f32 %v442_v1, %v286_v25  ;;  %v290_v31 = vstv %s900_s6  ;;  %v294_v32 = vstv %s902_s7  ;;  %p612_p4 = scmp.ne.s32.totalorder %s921_s27, %s611_s20  ;;  %s615_s18 = sshll.u32 %s708_s4, 4  ;;  %s616_s18 = int_to_ptr.vmem [resolvable:$false] %s615_s18 }
  0x6b   : > { %v253_v26 = vadd.f32 %v252_v12, %v249_v18  ;;  %v291_v36 = vmul.f32 %v443_v2, %v290_v31  ;;  %v278_v37 = vstv %s904_s25  ;;  %v295_v38 = vmul.f32 %v444_v4, %v294_v32  ;;  %s617_s22 = scalar_lea.vmem %s616_s18, 192  ;;  %p618_p10 = scmp.lt.s32.totalorder %s921_s27, %s616_s18 }
  0x6c   : > { %v272_v34 = vadd.f32 %v271_v20, %v268_v27  ;;  %v288_v35 = vadd.f32 %v287_v29, %v284_v28  ;;  %v298_v41 = vstv %s907_s30  ;;  %p613_p0 = pnand %p612_p4, %p998_p12  ;;  %p619_p11 = scmp.lt.s32.totalorder %s617_s22, %s611_s20 }
  0x6d   : > { %v256_v33 = vadd.f32 %v255_v22, %v253_v26 }
  0x6e   : > { %v276_v39 = vadd.f32 %v275_v23, %v272_v34  ;;  %v292_v40 = vadd.f32 %v291_v36, %v288_v35  ;;  %p614_p5 = pneg %p613_p0  ;;  %p620_p3 = por %p619_p11, %p618_p10 }
  0x6f   : > { %261 = vst.msk [vmem:[%s231_s28] sm:$0x3] %vm910_vm0, %v256_v33 }
  0x70   : > { %v279_v42 = vadd.f32 %v278_v37, %v276_v39  ;;  %v296_v43 = vadd.f32 %v295_v38, %v292_v40  ;;  %p621_p7 = pnand %p620_p3, %p614_p5 }
  0x72   : > { %453 = vst.msk [vmem:[%s231_s28 + $0x2] sm:$0x3] %vm910_vm0, %v279_v42  ;;  %v299_v44 = vadd.f32 %v298_v41, %v296_v43 }
  0x74   : > { %459 = vst.msk [vmem:[%s231_s28 + $0x4] sm:$0x3] %vm910_vm0, %v299_v44 }
  0x75   : > { %624 = shalt.err (!%p621_p7)
}
  0x76   : > { %s625_s19 = scalar_lea.hbm %s928_s11, 96  ;;  %s629_s25 = scalar_lea.hbm %s982_s3, 192 }
  0x77   : > { %p626_p9 = scmp.ne.s32.totalorder %s928_s11, %s625_s19  ;;  %p630_p1 = scmp.lt.u32.totalorder %s928_s11, %s982_s3 }
  0x78   : > { %p631_p8 = scmp.lt.u32.totalorder %s629_s25, %s625_s19  ;;  %p633_p4 = scmp.lt.u32.totalorder %s625_s19, %s928_s11 }
  0x79   : > { %p627_p2 = pnand %p626_p9, %p998_p12 }
  0x7a   : > { %p632_p13 = por %p631_p8, %p630_p1 }
  0x7b   : > { %p628_p6 = pneg %p627_p2 }
  0x7c   : > { %p634_p0 = por %p633_p4, %p632_p13 }
  0x7e   : > { %p635_p5 = pnand %p634_p0, %p628_p6 }
  0x80   : > { %638 = shalt.err (!%p635_p5)
}
  0x81   : > { %s709_s28 = smov 32   ;;  %s710_s9 = smov 2  }
  0x82   : > { %476 = dma.vmem_to_hbm [thread:$0]  (%p998_p12), %s921_s27, 96, %s928_s11, %s303_s15, %s709_s28, %s709_s28, %s710_s9  }
  0x83 PF: > { %s333_s21 = sand.u32 1, %s681_s12   ;;  %p999_p10 = scmp.ne.s32.totalorder %s990_s24, 0 }
  0x84   : > { %p1000_p11 = scmp.ge.s32.totalorder %s701_s17, 2  ;;  %s334_s10 = scalar_lea.sflag [#allocation4], %s333_s21 }
  0x86   : > { %p490_p3 = pnand %p1000_p11, %p999_p10 }
  0x88   : > { %676 = dma.done.wait (!%p490_p3), %s334_s10, 96  }
  0x89   : > { %678 = vsyncadd (!%p490_p3), %s334_s10, 4294967200  ;;  %s21_s17 = sadd.s32 1, %s701_s17   ;;  %s1001_s12 = smov %s685_s13 }
  0x8a   : > { %p18_p7 = scmp.ge.s32.totalorder %s21_s17, 4   ;;  %s1002_s13 = smov %s689_s14 }
  0x8b   : > { %s1003_s14 = smov %s847_s26  ;;  %s1004_s15 = smov %s697_s16 }
  0x8c   : > { %s1005_s16 = smov %s1007_s5  ;;  %20 = sbr.rel (!%p18_p7) target bundleno = 8 (0x8), region = 92 }
  0x93   :  { %339 = vsyncpa [#allocation3], 1 }
  0x94   :  { %341 = vsyncpa [#allocation3 + $0x1], 1 }
  0x95   :  { %342 = vsyncpa [#allocation4], 1 }
  0x96   :  { %344 = vsyncpa [#allocation4 + $0x1], 1 }
  0x97   :  { %345 = vsyncpa [#allocation5], 1 }
  0x98   :  { %347 = vsyncpa [#allocation5 + $0x1], 1 }
  0x99   :  { %348 = vsyncpa [#allocation6], 1 }
  0x9a   :  { %350 = vsyncpa [#allocation6 + $0x1], 1 }

</bundles_post_ra>
